<compile_context>
chip_gen: v5e
topology: v5e:2x2
jax: 0.10.0
libtpu: 0.0.40
codegen_flags: <defaults>
</compile_context>

<pallas_src>
import math

import jax
import jax.numpy as jnp
from jax.experimental import pallas as pl
from jax.experimental.pallas import tpu as pltpu


def _cdiv(a, b):
    return -(-a // b)


def _round_up(a, m):
    return _cdiv(a, m) * m


# ----------------------------------------------------------------------------
# Kernel body: broadcast add over a lane-dense tile.
# ----------------------------------------------------------------------------
def _posemb_add_kernel(x_ref, pe_ref, o_ref):
    # x_ref: (tb, tl), pe_ref: (1, tl) -> sublane-broadcast add, full-width store.
    o_ref[...] = x_ref[...] + pe_ref[...]


def _choose_tiles(B, ld, itemsize, block_bytes=2 * 1024 * 1024):
    """Pick (tb, tl) so one x/out block is ~block_bytes and lane/sublane aligned."""
    # ---- lane tile (last dim) ----
    if 8 * ld * itemsize <= block_bytes:
        tl = ld                           # full width: one 8-row slab fits
    else:
        tl = max(128, (block_bytes // (8 * itemsize)) // 128 * 128)
        # Prefer a tile that divides ld so every store stays unmasked; if ld is
        # not a multiple of 128 nothing divides it and only the tail block is
        # masked (correct, tiny perf cost).
        t = tl
        while t >= 128 and ld % t != 0:
            t -= 128
        if t >= 128:
            tl = t

    # ---- batch / sublane tile (second-to-last dim) ----
    row_bytes = tl * itemsize
    if B <= 8:
        tb = B                            # block extent == full array extent
    else:
        tb = max(8, (block_bytes // max(row_bytes, 1)) // 8 * 8)
        tb = min(tb, (B // 8) * 8)        # multiple of 8; tail rows masked if any
        # Best-effort: an even number of steps on the leading "parallel" axis
        # balances the two v7x TensorCores.
        nb = _cdiv(B, tb)
        if nb > 1 and nb % 2 == 1:
            tb_even = max(8, _round_up(_cdiv(B, nb + 1), 8))
            if _cdiv(B, tb_even) % 2 == 0:
                tb = tb_even
    return tb, tl


def positional_embedding_add(x, pe, *, min_pallas_bytes=256 * 1024):
    """x: (B, S, D); pe: (max_len, D).  Returns x + pe[None, :S]."""
    B, S, D = x.shape
    assert pe.shape[0] >= S and pe.shape[1] == D
    # NOTE: pe is cast to x.dtype (bit-exact for the f32 demo); for bf16 inputs
    # PyTorch type promotion would keep the result in f32 instead.
    pe_row = pe[:S].astype(x.dtype)

    itemsize = x.dtype.itemsize
    ld = S * D
    total_bytes = B * ld * itemsize

    # Tiny inputs: XLA's fused add beats the fixed pallas_call launch overhead.
    if total_bytes < min_pallas_bytes:
        return x + pe_row[None]

    x2 = x.reshape(B, ld)                 # lane-dense layout for the kernel
    pe2 = pe_row.reshape(1, ld)

    tb, tl = _choose_tiles(B, ld, itemsize)
    grid = (_cdiv(B, tb), _cdiv(ld, tl))

    out = pl.pallas_call(
        _posemb_add_kernel,
        out_shape=jax.ShapeDtypeStruct((B, ld), x2.dtype),
        grid=grid,
        in_specs=[
            pl.BlockSpec((tb, tl), lambda i, j: (i, j)),
            pl.BlockSpec((1, tl), lambda i, j: (0, j)),   # pe: broadcast row
        ],
        out_specs=pl.BlockSpec((tb, tl), lambda i, j: (i, j)),
        input_output_aliases={0: 0},      # write result back into x2's buffer
        cost_estimate=pl.CostEstimate(
            flops=B * ld,
            transcendentals=0,
            bytes_accessed=(2 * B + 1) * ld * itemsize),
        compiler_params=pltpu.CompilerParams(
            dimension_semantics=("parallel", "parallel")),
    )(x2, pe2)
    return out.reshape(B, S, D)


# ----------------------------------------------------------------------------
# Init-time buffer (matches the PyTorch constructor exactly)
# ----------------------------------------------------------------------------
def make_positional_encoding(max_len, d_model):
    # NOTE: PyTorch sets self.max_len = max(10000, max_len) but builds the pe
    # buffer with the original `max_len` argument; we mirror the buffer.
    position = jnp.arange(0, max_len, dtype=jnp.float32)[:, None]
    div_term = jnp.exp(jnp.arange(0, d_model, 2, dtype=jnp.float32)
                       * (-math.log(10000.0) / d_model))
    pe = jnp.zeros((max_len, d_model), dtype=jnp.float32)
    pe = pe.at[:, 0::2].set(jnp.sin(position * div_term))
    pe = pe.at[:, 1::2].set(jnp.cos(position * div_term))
    return pe


def positional_embedding_forward(x, pe, *, min_pallas_bytes=256 * 1024):
    return positional_embedding_add(x, pe, min_pallas_bytes=min_pallas_bytes)


# ----------------------------------------------------------------------------
# Main
# ----------------------------------------------------------------------------
if __name__ == "__main__":
    d_model = 32
    max_len = 1000
    batch, seq = 2, 8

    # "Registered buffer": built once at init, outside the jitted forward.
    pe = make_positional_encoding(max_len, d_model)

    fwd = jax.jit(positional_embedding_forward,
                  donate_argnums=0,
                  static_argnames=("min_pallas_bytes",))

    # --- demo shape (forces the Pallas path so the kernel is exercised) ---
    key = jax.random.PRNGKey(0)
    x = jax.random.normal(key, (batch, seq, d_model), dtype=jnp.float32)
    y_ref = x + pe[None, :seq]                 # reference, computed before donation
    y = fwd(x, pe, min_pallas_bytes=0)
    jax.block_until_ready(y)
    assert y.shape == (batch, seq, d_model)
    assert bool(jnp.all(jnp.isfinite(y)))
    assert bool(jnp.allclose(y, y_ref, atol=1e-6, rtol=1e-6))

    # --- second small case that exercises the multi-block pipelined grid ---
    xb = jax.random.normal(jax.random.PRNGKey(1), (512, 64, d_model),
                           dtype=jnp.float32)
    yb_ref = xb + pe[None, :64]
    yb = fwd(xb, pe, min_pallas_bytes=0)
    jax.block_until_ready(yb)
    assert bool(jnp.allclose(yb, yb_ref, atol=1e-6, rtol=1e-6))

    print("KERNEL_OK")
</pallas_src>

<mosaic_0001>
module attributes {stable_mosaic.version = 11 : i64} {
  func.func @_posemb_add_kernel(%arg0: i32, %arg1: i32, %arg2: memref<2x256xf32, #tpu.memory_space<vmem>>, %arg3: memref<1x256xf32, #tpu.memory_space<vmem>>, %arg4: memref<2x256xf32, #tpu.memory_space<vmem>>) attributes {dimension_semantics = [#tpu.dimension_semantics<parallel>, #tpu.dimension_semantics<parallel>], iteration_bounds = array<i64: 1, 1>, scalar_prefetch = 0 : i64, scratch_operands = 0 : i64, tpu.core_type = #tpu.core_type<tc>, window_params = [{transform_indices = @transform_0, window_bounds = array<i64: 2, 256>}, {transform_indices = @transform_1, window_bounds = array<i64: 1, 256>}, {transform_indices = @transform_2, window_bounds = array<i64: 2, 256>}]} {
    %c0 = arith.constant 0 : index
    %c0_0 = arith.constant 0 : index
    %0 = vector.load %arg2[%c0, %c0_0] : memref<2x256xf32, #tpu.memory_space<vmem>>, vector<2x256xf32>
    %c0_1 = arith.constant 0 : index
    %c0_2 = arith.constant 0 : index
    %1 = vector.load %arg3[%c0_1, %c0_2] : memref<1x256xf32, #tpu.memory_space<vmem>>, vector<1x256xf32>
    %2 = vector.broadcast %1 : vector<1x256xf32> to vector<2x256xf32>
    %3 = arith.addf %0, %2 : vector<2x256xf32>
    %c0_3 = arith.constant 0 : index
    %c0_4 = arith.constant 0 : index
    %4 = vector.load %arg4[%c0_3, %c0_4] : memref<2x256xf32, #tpu.memory_space<vmem>>, vector<2x256xf32>
    tpu.vector_store %arg4[%c0_3, %c0_4], %3 {strides = array<i32>} : memref<2x256xf32, #tpu.memory_space<vmem>>, vector<2x256xf32>,
    return
  }
  func.func @transform_0(%arg0: i32, %arg1: i32) -> (i32, i32) {
    %c0_i32 = arith.constant 0 : i32
    return %arg0, %arg1 : i32, i32
  }
  func.func @transform_1(%arg0: i32, %arg1: i32) -> (i32, i32) {
    %c0_i32 = arith.constant 0 : i32
    %c0_i32_0 = arith.constant 0 : i32
    return %c0_i32, %arg1 : i32, i32
  }
  func.func @transform_2(%arg0: i32, %arg1: i32) -> (i32, i32) {
    %c0_i32 = arith.constant 0 : i32
    return %arg0, %arg1 : i32, i32
  }
}

</mosaic_0001>

<bundles_post_ra>
// kernel: positional_embedding_forward.1
= control target key start
LH: loop header
LB: loop body
LE: loop exit
PB: predicated region body
PF: predicated region fallthrough
CT: control target
= control target key end

     0   :  { %vm17_vm0 = vcmask 1041408   ;;  %s50_s1 = inlined_call_operand.vmem [shape: f32[1,256], index: 1, kind: input, shape index: {}]   ;;  %s51_s0 = inlined_call_operand.vmem [shape: f32[2,256], index: 0, kind: input, shape index: {}, may-alias: {0,2}]   ;;  %s52_s2 = inlined_call_operand.vmem [shape: f32[2,256], index: 2, kind: output, shape index: {}, may-alias: {0,2}]  }
   0x1   :  { %v12_v0 = vld [vmem:[%s50_s1] sm:$0x3] }
   0x2   :  { %v14_v1 = vperm.slane %v12_v0, 0  ;;  %v15_v2 = vperm.slane %v12_v0, 1  ;;  %v11_v3 = vld [vmem:[%s51_s0] sm:$0xf] }
   0x4   :  { %v16_v4 = vrot.slane %v15_v2, 6 }
   0x6   :  { %v18_v5 = vsel %vm17_vm0, %v14_v1, %v16_v4 }
   0x7   :  { %v20_v6 = vadd.f32 %v18_v5, %v11_v3 }
   0x9   :  { %21 = vst [vmem:[%s52_s2] sm:$0xf] %v20_v6 }

</bundles_post_ra>
